<compile_context>
chip_gen: v7x
topology: tpu7x:2x2x1
jax: 0.10.0
libtpu: 0.0.40
codegen_flags: <defaults>
</compile_context>

<pallas_src>
import jax
import jax.numpy as jnp
from jax.experimental import pallas as pl
from jax.experimental.pallas import tpu as pltpu

_LANE = 128
_SUBLANE = 8
_MAX_BATCH_TILE = 1024  # multiple of 256 (v6e/v7x MXU pass height)


def _round_up(x, m):
    return ((x + m - 1) // m) * m


def _choose_batch_tile(batch):
    """One fat grid step for small/medium B; 1024-row tiles only for large B."""
    batch = max(batch, 1)
    if batch <= _MAX_BATCH_TILE:
        return _round_up(batch, _SUBLANE)
    return _MAX_BATCH_TILE


def _vmem_estimate_bytes(batch_tile, d_in, hidden, d_out):
    """Rough VMEM footprint (lane-rounded layouts, double-buffered x/out tiles)."""
    bf16, f32 = 2, 4
    d_in_l = _round_up(d_in, _LANE)
    hid_l = _round_up(hidden, _LANE)
    d_out_l = _round_up(d_out, _LANE)
    x_tiles = 2 * batch_tile * d_in_l * f32
    o_tiles = 2 * batch_tile * d_out_l * f32
    weights = 2 * (d_in_l * hid_l + hid_l * hid_l + hid_l * d_out_l) * bf16
    biases = 2 * _SUBLANE * (2 * hid_l + d_out_l) * f32
    acts = 2 * batch_tile * hid_l * f32
    return x_tiles + o_tiles + weights + biases + acts


def _mlp_logits(x_ref, w1_ref, b1_ref, w2_ref, b2_ref, w3_ref, b3_ref):
    """Shared 3-layer MLP body: bf16 MXU operands, f32 accumulation/activations."""
    x = x_ref[...].astype(w1_ref.dtype)                         # f32 -> bf16 in VMEM
    h1 = jnp.dot(x, w1_ref[...], preferred_element_type=jnp.float32)
    h1 = jnp.maximum(h1 + b1_ref[...], 0.0)
    h2 = jnp.dot(h1.astype(w2_ref.dtype), w2_ref[...],
                 preferred_element_type=jnp.float32)
    h2 = jnp.maximum(h2 + b2_ref[...], 0.0)
    return jnp.dot(h2.astype(w3_ref.dtype), w3_ref[...],
                   preferred_element_type=jnp.float32) + b3_ref[...]


def _logsoftmax_kernel(x_ref, w1_ref, b1_ref, w2_ref, b2_ref, w3_ref, b3_ref,
                       out_ref):
    logits = _mlp_logits(x_ref, w1_ref, b1_ref, w2_ref, b2_ref, w3_ref, b3_ref)
    # Numerically stable log-softmax over exactly the d_out real classes.
    m = jnp.max(logits, axis=-1, keepdims=True)
    shifted = logits - m
    lse = jnp.log(jnp.sum(jnp.exp(shifted), axis=-1, keepdims=True))
    out_ref[...] = (shifted - lse).astype(out_ref.dtype)


def _argmax_kernel(x_ref, w1_ref, b1_ref, w2_ref, b2_ref, w3_ref, b3_ref,
                   out_ref):
    # argmax(log_softmax(z)) == argmax(z): skip the softmax entirely.
    logits = _mlp_logits(x_ref, w1_ref, b1_ref, w2_ref, b2_ref, w3_ref, b3_ref)
    m = jnp.max(logits, axis=-1, keepdims=True)
    idx = jax.lax.broadcasted_iota(jnp.int32, logits.shape, 1)
    cand = jnp.where(logits == m, idx, jnp.int32(logits.shape[-1]))
    out_ref[...] = jnp.min(cand, axis=-1, keepdims=True).astype(out_ref.dtype)


def _run(kernel, x, params, out_dtype, out_cols, batch_tile):
    B, d_in = x.shape
    hidden = params["w1"].shape[1]
    d_out = params["w3"].shape[1]

    if batch_tile is None:
        batch_tile = _choose_batch_tile(B)
    batch_tile = max(_round_up(batch_tile, _SUBLANE), _SUBLANE)
    grid = (pl.cdiv(B, batch_tile),)

    # Constant-size casts (do not scale with B): weights bf16, biases f32.
    w1 = params["w1"].astype(jnp.bfloat16)
    w2 = params["w2"].astype(jnp.bfloat16)
    w3 = params["w3"].astype(jnp.bfloat16)
    b1 = params["b1"].astype(jnp.float32)
    b2 = params["b2"].astype(jnp.float32)
    b3 = params["b3"].astype(jnp.float32)

    est = _vmem_estimate_bytes(batch_tile, d_in, hidden, d_out)
    vmem_limit = None
    if est > 12 * 1024 * 1024:           # v5e default scoped limit is 16 MiB
        vmem_limit = min(int(est * 3 // 2), 48 * 1024 * 1024)  # v7x headroom

    # TODO(synk): for very large hidden dims (H >= ~4096) the resident w2 block
    # alone approaches v7x's 64 MiB VMEM; add an 'arbitrary' K-tiling grid axis
    # with a pl.when-initialized accumulator instead of keeping all weights
    # resident.

    const = lambda i: (0, 0)
    return pl.pallas_call(
        kernel,
        out_shape=jax.ShapeDtypeStruct((B, out_cols), out_dtype),
        grid_spec=pltpu.PrefetchScalarGridSpec(
            num_scalar_prefetch=0,
            grid=grid,
            in_specs=[
                pl.BlockSpec((batch_tile, d_in), lambda i: (i, 0)),  # x tile (f32)
                pl.BlockSpec((d_in, hidden), const),                 # w1 (resident)
                pl.BlockSpec((1, hidden), const),                    # b1
                pl.BlockSpec((hidden, hidden), const),               # w2
                pl.BlockSpec((1, hidden), const),                    # b2
                pl.BlockSpec((hidden, d_out), const),                # w3
                pl.BlockSpec((1, d_out), const),                     # b3
            ],
            out_specs=pl.BlockSpec((batch_tile, out_cols), lambda i: (i, 0)),
        ),
        compiler_params=pltpu.CompilerParams(
            dimension_semantics=("parallel",),
            vmem_limit_bytes=vmem_limit),
    )(x, w1, b1, w2, b2, w3, b3)


def multiclass_inv_dynamic_forward(x, params, *, batch_tile=None):
    """Forward pass: (B, input_dim) f32 -> (B, output_dim) log-probabilities f32.

    params: w1 (D_in,H), b1 (1,H), w2 (H,H), b2 (1,H), w3 (H,D_out), b3 (1,D_out)
            stored as x @ W + b (i.e. W = W_torch.T).
    """
    d_out = params["w3"].shape[1]
    return _run(_logsoftmax_kernel, x, params, jnp.float32, d_out, batch_tile)


def multiclass_inv_dynamic_predict(x, params, *, batch_tile=None):
    """predict() equivalent: class index per row, computed in-kernel (no softmax)."""
    out = _run(_argmax_kernel, x, params, jnp.int32, 1, batch_tile)
    return out[:, 0]


def init_params(key, input_dim, output_dim, hidden_dim):
    """Deterministic, PyTorch-Linear-style (uniform +-1/sqrt(fan_in)) init."""
    ks = jax.random.split(key, 6)

    def linear(kw, kb, fan_in, fan_out):
        bound = 1.0 / (fan_in ** 0.5)
        w = jax.random.uniform(kw, (fan_in, fan_out), jnp.float32, -bound, bound)
        b = jax.random.uniform(kb, (1, fan_out), jnp.float32, -bound, bound)
        return w, b

    w1, b1 = linear(ks[0], ks[1], input_dim, hidden_dim)
    w2, b2 = linear(ks[2], ks[3], hidden_dim, hidden_dim)
    w3, b3 = linear(ks[4], ks[5], hidden_dim, output_dim)
    return dict(w1=w1, b1=b1, w2=w2, b2=b2, w3=w3, b3=b3)


def _reference(x, p):
    """Reference matching the kernel's numerics (bf16 MXU operands, f32 acc)."""
    bf = jnp.bfloat16
    h1 = jax.nn.relu(jnp.dot(x.astype(bf), p["w1"].astype(bf),
                             preferred_element_type=jnp.float32) + p["b1"])
    h2 = jax.nn.relu(jnp.dot(h1.astype(bf), p["w2"].astype(bf),
                             preferred_element_type=jnp.float32) + p["b2"])
    logits = jnp.dot(h2.astype(bf), p["w3"].astype(bf),
                     preferred_element_type=jnp.float32) + p["b3"]
    return jax.nn.log_softmax(logits, axis=-1)


if __name__ == "__main__":
    key = jax.random.PRNGKey(0)
    k_x, k_p = jax.random.split(key)

    batch, input_dim, hidden_dim, output_dim = 16, 32, 32, 16
    x = jax.random.normal(k_x, (batch, input_dim), jnp.float32)
    params = init_params(k_p, input_dim, output_dim, hidden_dim)

    out = multiclass_inv_dynamic_forward(x, params)
    out = jax.block_until_ready(out)

    assert out.shape == (batch, output_dim)
    assert out.dtype == jnp.float32
    ref = _reference(x, params)
    assert jnp.allclose(out, ref, atol=2e-3, rtol=2e-3), "mismatch vs reference"
    # log-probabilities must normalize to 1 over the real classes
    assert jnp.allclose(jnp.sum(jnp.exp(out), axis=-1), 1.0, atol=1e-3)

    pred = multiclass_inv_dynamic_predict(x, params)
    pred = jax.block_until_ready(pred)
    assert pred.shape == (batch,)
    # in-kernel argmax must agree with argmax over the kernel's own log-probs
    assert bool(jnp.all(pred == jnp.argmax(out, axis=-1)))

    print("KERNEL_OK")
</pallas_src>

<mosaic_0001>
module attributes {stable_mosaic.version = 11 : i64} {
  func.func @_logsoftmax_kernel(%arg0: i32, %arg1: memref<16x32xf32, #tpu.memory_space<vmem>>, %arg2: memref<32x32xbf16, #tpu.memory_space<vmem>>, %arg3: memref<1x32xf32, #tpu.memory_space<vmem>>, %arg4: memref<32x32xbf16, #tpu.memory_space<vmem>>, %arg5: memref<1x32xf32, #tpu.memory_space<vmem>>, %arg6: memref<32x16xbf16, #tpu.memory_space<vmem>>, %arg7: memref<1x16xf32, #tpu.memory_space<vmem>>, %arg8: memref<16x16xf32, #tpu.memory_space<vmem>>) attributes {dimension_semantics = [#tpu.dimension_semantics<parallel>], iteration_bounds = array<i64: 1>, scalar_prefetch = 0 : i64, scratch_operands = 0 : i64, tpu.core_type = #tpu.core_type<tc>, window_params = [{transform_indices = @transform_0, window_bounds = array<i64: 16, 32>}, {pipeline_mode = #tpu.pipeline_mode<synchronous>, transform_indices = @transform_1, window_bounds = array<i64: 32, 32>}, {pipeline_mode = #tpu.pipeline_mode<synchronous>, transform_indices = @transform_2, window_bounds = array<i64: 1, 32>}, {pipeline_mode = #tpu.pipeline_mode<synchronous>, transform_indices = @transform_3, window_bounds = array<i64: 32, 32>}, {pipeline_mode = #tpu.pipeline_mode<synchronous>, transform_indices = @transform_4, window_bounds = array<i64: 1, 32>}, {pipeline_mode = #tpu.pipeline_mode<synchronous>, transform_indices = @transform_5, window_bounds = array<i64: 32, 16>}, {pipeline_mode = #tpu.pipeline_mode<synchronous>, transform_indices = @transform_6, window_bounds = array<i64: 1, 16>}, {transform_indices = @transform_7, window_bounds = array<i64: 16, 16>}]} {
    %c0 = arith.constant 0 : index
    %c0_0 = arith.constant 0 : index
    %0 = vector.load %arg1[%c0, %c0_0] : memref<16x32xf32, #tpu.memory_space<vmem>>, vector<16x32xf32>
    %1 = arith.truncf %0 : vector<16x32xf32> to vector<16x32xbf16>
    %c0_1 = arith.constant 0 : index
    %c0_2 = arith.constant 0 : index
    %2 = vector.load %arg2[%c0_1, %c0_2] : memref<32x32xbf16, #tpu.memory_space<vmem>>, vector<32x32xbf16>
    %cst = arith.constant dense<0.000000e+00> : vector<16x32xf32>
    %3 = tpu.matmul %1, %2, %cst {dimension_numbers = #tpu.dot_dimension_numbers<[1], [0], [0], [1], [0, 0, 1, 1], [], []>} : vector<16x32xbf16>, vector<32x32xbf16>, vector<16x32xf32> -> vector<16x32xf32>
    %c0_3 = arith.constant 0 : index
    %c0_4 = arith.constant 0 : index
    %4 = vector.load %arg3[%c0_3, %c0_4] : memref<1x32xf32, #tpu.memory_space<vmem>>, vector<1x32xf32>
    %5 = vector.broadcast %4 : vector<1x32xf32> to vector<16x32xf32>
    %6 = arith.addf %3, %5 : vector<16x32xf32>
    %cst_5 = arith.constant 0.000000e+00 : f32
    %7 = vector.broadcast %cst_5 : f32 to vector<16x32xf32>
    %8 = arith.maximumf %6, %7 : vector<16x32xf32>
    %9 = arith.truncf %8 : vector<16x32xf32> to vector<16x32xbf16>
    %c0_6 = arith.constant 0 : index
    %c0_7 = arith.constant 0 : index
    %10 = vector.load %arg4[%c0_6, %c0_7] : memref<32x32xbf16, #tpu.memory_space<vmem>>, vector<32x32xbf16>
    %cst_8 = arith.constant dense<0.000000e+00> : vector<16x32xf32>
    %11 = tpu.matmul %9, %10, %cst_8 {dimension_numbers = #tpu.dot_dimension_numbers<[1], [0], [0], [1], [0, 0, 1, 1], [], []>} : vector<16x32xbf16>, vector<32x32xbf16>, vector<16x32xf32> -> vector<16x32xf32>
    %c0_9 = arith.constant 0 : index
    %c0_10 = arith.constant 0 : index
    %12 = vector.load %arg5[%c0_9, %c0_10] : memref<1x32xf32, #tpu.memory_space<vmem>>, vector<1x32xf32>
    %13 = vector.broadcast %12 : vector<1x32xf32> to vector<16x32xf32>
    %14 = arith.addf %11, %13 : vector<16x32xf32>
    %cst_11 = arith.constant 0.000000e+00 : f32
    %15 = vector.broadcast %cst_11 : f32 to vector<16x32xf32>
    %16 = arith.maximumf %14, %15 : vector<16x32xf32>
    %17 = arith.truncf %16 : vector<16x32xf32> to vector<16x32xbf16>
    %c0_12 = arith.constant 0 : index
    %c0_13 = arith.constant 0 : index
    %18 = vector.load %arg6[%c0_12, %c0_13] : memref<32x16xbf16, #tpu.memory_space<vmem>>, vector<32x16xbf16>
    %cst_14 = arith.constant dense<0.000000e+00> : vector<16x16xf32>
    %19 = tpu.matmul %17, %18, %cst_14 {dimension_numbers = #tpu.dot_dimension_numbers<[1], [0], [0], [1], [0, 0, 1, 1], [], []>} : vector<16x32xbf16>, vector<32x16xbf16>, vector<16x16xf32> -> vector<16x16xf32>
    %c0_15 = arith.constant 0 : index
    %c0_16 = arith.constant 0 : index
    %20 = vector.load %arg7[%c0_15, %c0_16] : memref<1x16xf32, #tpu.memory_space<vmem>>, vector<1x16xf32>
    %21 = vector.broadcast %20 : vector<1x16xf32> to vector<16x16xf32>
    %22 = arith.addf %19, %21 : vector<16x16xf32>
    %cst_17 = arith.constant dense<0xFF800000> : vector<16xf32>
    %23 = vector.multi_reduction <maximumf>, %22, %cst_17 [1] : vector<16x16xf32> to vector<16xf32>
    %24 = vector.shape_cast %23 : vector<16xf32> to vector<16x1xf32>
    %25 = vector.broadcast %24 : vector<16x1xf32> to vector<16x16xf32>
    %26 = arith.subf %22, %25 : vector<16x16xf32>
    %27 = math.exp %26 : vector<16x16xf32>
    %cst_18 = arith.constant dense<0.000000e+00> : vector<16xf32>
    %28 = vector.multi_reduction <add>, %27, %cst_18 [1] : vector<16x16xf32> to vector<16xf32>
    %29 = vector.shape_cast %28 : vector<16xf32> to vector<16x1xf32>
    %30 = math.log %29 : vector<16x1xf32>
    %31 = vector.broadcast %30 : vector<16x1xf32> to vector<16x16xf32>
    %32 = arith.subf %26, %31 : vector<16x16xf32>
    %c0_19 = arith.constant 0 : index
    %c0_20 = arith.constant 0 : index
    %33 = vector.load %arg8[%c0_19, %c0_20] : memref<16x16xf32, #tpu.memory_space<vmem>>, vector<16x16xf32>
    tpu.vector_store %arg8[%c0_19, %c0_20], %32 {strides = array<i32>} : memref<16x16xf32, #tpu.memory_space<vmem>>, vector<16x16xf32>,
    return
  }
  func.func @transform_0(%arg0: i32) -> (i32, i32) {
    %c0_i32 = arith.constant 0 : i32
    %c0_i32_0 = arith.constant 0 : i32
    return %arg0, %c0_i32 : i32, i32
  }
  func.func @transform_1(%arg0: i32) -> (i32, i32) {
    %c0_i32 = arith.constant 0 : i32
    %c0_i32_0 = arith.constant 0 : i32
    %c0_i32_1 = arith.constant 0 : i32
    return %c0_i32, %c0_i32_0 : i32, i32
  }
  func.func @transform_2(%arg0: i32) -> (i32, i32) {
    %c0_i32 = arith.constant 0 : i32
    %c0_i32_0 = arith.constant 0 : i32
    %c0_i32_1 = arith.constant 0 : i32
    return %c0_i32, %c0_i32_0 : i32, i32
  }
  func.func @transform_3(%arg0: i32) -> (i32, i32) {
    %c0_i32 = arith.constant 0 : i32
    %c0_i32_0 = arith.constant 0 : i32
    %c0_i32_1 = arith.constant 0 : i32
    return %c0_i32, %c0_i32_0 : i32, i32
  }
  func.func @transform_4(%arg0: i32) -> (i32, i32) {
    %c0_i32 = arith.constant 0 : i32
    %c0_i32_0 = arith.constant 0 : i32
    %c0_i32_1 = arith.constant 0 : i32
    return %c0_i32, %c0_i32_0 : i32, i32
  }
  func.func @transform_5(%arg0: i32) -> (i32, i32) {
    %c0_i32 = arith.constant 0 : i32
    %c0_i32_0 = arith.constant 0 : i32
    %c0_i32_1 = arith.constant 0 : i32
    return %c0_i32, %c0_i32_0 : i32, i32
  }
  func.func @transform_6(%arg0: i32) -> (i32, i32) {
    %c0_i32 = arith.constant 0 : i32
    %c0_i32_0 = arith.constant 0 : i32
    %c0_i32_1 = arith.constant 0 : i32
    return %c0_i32, %c0_i32_0 : i32, i32
  }
  func.func @transform_7(%arg0: i32) -> (i32, i32) {
    %c0_i32 = arith.constant 0 : i32
    %c0_i32_0 = arith.constant 0 : i32
    return %arg0, %c0_i32 : i32, i32
  }
}

</mosaic_0001>

<bundles_post_ra>
// kernel: tpu_custom_call.1
= control target key start
LH: loop header
LB: loop body
LE: loop exit
PB: predicated region body
PF: predicated region fallthrough
CT: control target
= control target key end

     0   :  { %12 = vsyncpa [#allocation3], 0  ;;  %s520_s0 = inlined_call_operand.vmem [shape: f32[16,32], index: 0, kind: input, shape index: {}]   ;;  %s521_s1 = inlined_call_operand.hbm [shape: bf16[32,32], index: 1, kind: input, shape index: {}]   ;;  %s522_s2 = inlined_call_operand.vmem [shape: f32[1,32], index: 2, kind: input, shape index: {}]   ;;  %s523_s3 = inlined_call_operand.vmem [shape: bf16[32,32], index: 3, kind: input, shape index: {}]   ;;  %s524_s4 = inlined_call_operand.vmem [shape: f32[1,32], index: 4, kind: input, shape index: {}]   ;;  %s525_s5 = inlined_call_operand.vmem [shape: bf16[32,16], index: 5, kind: input, shape index: {}]   ;;  %s526_s6 = inlined_call_operand.vmem [shape: f32[1,16], index: 6, kind: input, shape index: {}]   ;;  %s527_s7 = inlined_call_operand.hbm [shape: f32[16,16], index: 7, kind: output, shape index: {}]  }
   0x1   :  { %13 = vsyncpa [#allocation4], 0  ;;  %s412_s24 = smov [#allocation2]   ;;  %s364_s28 = scalar_lea.hbm %s521_s1, 256 }
   0x2   :  { %s21_s25 = sshll.u32 %s412_s24, 4  ;;  %p365_p0 = scmp.ne.s32.totalorder %s521_s1, %s364_s28  ;;  %s22_s25 = int_to_ptr.vmem [resolvable:$true] %s21_s25 }
   0x3   :  { %p368_p1 = scmp.lt.u32.totalorder %s364_s28, %s521_s1 }
   0x5   :  { %p370_p2 = pnand %p368_p1, %p365_p0 }
   0x7   :  { %373 = shalt.err (!%p370_p2)
}
   0x8   :  { %s374_s10 = scalar_lea.vmem %s22_s25, 256  ;;  %p379_p4 = scmp.lt.s32.totalorder %s22_s25, %s22_s25 }
   0x9   :  { %p375_p3 = scmp.ne.s32.totalorder %s22_s25, %s374_s10  ;;  %p380_p5 = scmp.lt.s32.totalorder %s374_s10, %s374_s10 }
   0xb   :  { %p381_p6 = por %p380_p5, %p379_p4 }
   0xd   :  { %p382_p7 = pnand %p381_p6, %p375_p3 }
   0xf   :  { %385 = shalt.err (!%p382_p7)
}
  0x10   :  { %s413_s11 = smov 64   ;;  %s414_s12 = smov 4  }
  0x11   :  { %27 = dma.hbm_to_vmem [thread:$0]  %s521_s1, 256, %s22_s25, [#allocation3], %s413_s11, %s413_s11, %s414_s12  }
  0x12   :  { %408 = dma.done.wait [#allocation3], 256  }
  0x13   :  { %409 = vsyncadd [#allocation3], 4294967040  ;;  %v415_v0 = vmov 0.0   ;;  %vm416_vm0 = vmmov 0   ;;  %v350_v1 = vld [vmem:[#allocation2] sm:$0xff]   ;;  %v351_v2 = vld [vmem:[#allocation2 + $0x8] sm:$0xff]  }
  0x14   :  { %318 = vmatprep.subr.bf16.mxu0 %v415_v0  ;;  %322 = vmatprep.mubr.msk.bf16.mxu0 %vm416_vm0, %v415_v0  ;;  %v42_v3 = vld [vmem:[%s520_s0] sm:$0xff]  ;;  %v43_v4 = vld [vmem:[%s520_s0 + $0x8] sm:$0xff]  ;;  %vm68_vm1 = vcmask 261120   ;;  %vm253_vm2 = vcmask 130048  }
  0x15   :  { %326 = vmatprep.subr.bf16.mxu1 %v415_v0  ;;  %330 = vmatprep.mubr.msk.bf16.mxu1 %vm416_vm0, %v415_v0  ;;  %v44_v5 = vpack.c.bf16 %v43_v4, %v42_v3  ;;  %v352_v6 = vld [vmem:[%s523_s3] sm:$0xff]   ;;  %v353_v7 = vld [vmem:[%s523_s3 + $0x8] sm:$0xff]  }
  0x16   :  { %319 = vmatpush3.bf16.msra.mxu0 %v350_v1  ;;  %327 = vmatpush3.bf16.msra.mxu1 %v352_v6  ;;  %v297_v8 = vld [vmem:[%s522_s2] ss:$0 sm:$0xff]  ;;  %v355_v19 = vld [vmem:[%s525_s5 + $0x8] sm:$0xff]  }
  0x17   :  { %320 = vmatprep.subr.bf16.mxu0 %v415_v0  ;;  %328 = vmatprep.subr.bf16.mxu1 %v415_v0  ;;  %v354_v18 = vld [vmem:[%s525_s5] sm:$0xff]  }
  0x18   :  { %v301_v20 = vld [vmem:[%s524_s4] ss:$0 sm:$0xff]  ;;  %s417_s4 = smov [#allocation5]  }
  0x19   :  { %v305_v30 = vld [vmem:[%s526_s6] ss:$0 sm:$0xff]  ;;  %s285_s5 = sshll.u32 %s417_s4, 4  ;;  %s286_s5 = int_to_ptr.vmem [resolvable:$true] %s285_s5 }
  0x1a   :  { %321 = vmatpush3.bf16.msra.mxu0 %v351_v2  ;;  %329 = vmatpush3.bf16.msra.mxu1 %v353_v7  ;;  %s386_s6 = scalar_lea.vmem %s286_s5, 256  ;;  %p391_p9 = scmp.lt.s32.totalorder %s286_s5, %s286_s5 }
  0x1b   :  { %334 = vmatprep.subr.bf16.mxu0 %v415_v0  ;;  %p387_p8 = scmp.ne.s32.totalorder %s286_s5, %s386_s6  ;;  %p392_p10 = scmp.lt.s32.totalorder %s386_s6, %s386_s6 }
  0x1d   :  { %323 = vmatmul.mubr.msk.bf16.vlgmr.msra.gmra.mrb[0].mxu0 %vm68_vm1, %v44_v5  ;;  %p393_p11 = por %p392_p10, %p391_p9 }
  0x1e   :  { %338 = vmatprep.mubr.msk.bf16.mxu0 %vm416_vm0, %v415_v0  ;;  %335 = vmatpush3.bf16.msra.mxu0 %v354_v18 }
  0x1f   :  { %336 = vmatprep.subr.bf16.mxu0 %v415_v0  ;;  %p394_p12 = pnand %p393_p11, %p387_p8 }
  0x22   :  { %337 = vmatpush3.bf16.msra.mxu0 %v355_v19 }
  0xf0   :  { %v106_v9 = vpop.f32.mrb[0].mxu0 }
  0xf1   :  { %v107_v10 = vadd.f32 %v297_v8, %v106_v9  ;;  %v324_v11 = vpop.f32.mrb[1].mxu0 }
  0xf2   :  { %v109_v12 = vpop.f32.mrb[2].mxu0 }
  0xf3   :  { %v110_v13 = vadd.f32 %v297_v8, %v109_v12  ;;  %v325_v14 = vpop.f32.mrb[3].mxu0  ;;  %v113_v15 = vmax.f32 %v107_v10, 0.0 }
  0xf5   :  { %v114_v16 = vmax.f32 %v110_v13, 0.0 }
  0xf7   :  { %v115_v17 = vpack.c.bf16 %v114_v16, %v113_v15 }
  0xf9   :  { %331 = vmatmul.mubr.msk.bf16.vlgmr.msra.gmra.mrb[0].mxu1 %vm68_vm1, %v115_v17 }
 0x1cc   :  { %v176_v21 = vpop.f32.mrb[0].mxu1 }
 0x1cd   :  { %v177_v22 = vadd.f32 %v301_v20, %v176_v21  ;;  %v332_v23 = vpop.f32.mrb[1].mxu1 }
 0x1ce   :  { %v179_v24 = vpop.f32.mrb[2].mxu1 }
 0x1cf   :  { %v180_v25 = vadd.f32 %v301_v20, %v179_v24  ;;  %v333_v26 = vpop.f32.mrb[3].mxu1  ;;  %v183_v27 = vmax.f32 %v177_v22, 0.0 }
 0x1d1   :  { %v184_v28 = vmax.f32 %v180_v25, 0.0 }
 0x1d3   :  { %v185_v29 = vpack.c.bf16 %v184_v28, %v183_v27 }
 0x1d5   :  { %339 = vmatmul.mubr.msk.bf16.vlgmr.msra.gmra.mrb[4].mxu0 %vm68_vm1, %v185_v29 }
 0x2a8   :  { %v246_v31 = vpop.f32.mrb[4].mxu0 }
 0x2a9   :  { %v247_v32 = vadd.f32 %v305_v30, %v246_v31  ;;  %v340_v33 = vpop.f32.mrb[5].mxu0 }
 0x2aa   :  { %v249_v34 = vpop.f32.mrb[6].mxu0 }
 0x2ab   :  { %v250_v35 = vadd.f32 %v305_v30, %v249_v34  ;;  %v341_v36 = vpop.f32.mrb[7].mxu0  ;;  %v254_v37 = vsel %vm253_vm2, %v247_v32, -inf }
 0x2ac   :  { %255 = vmax.xlane.f32.xlu0 %v254_v37 }
 0x2ad   :  { %v257_v38 = vsel %vm253_vm2, %v250_v35, -inf }
 0x2b0   :  { %258 = vmax.xlane.f32.xlu0 %v257_v38 }
 0x339   :  { %v256_v39 = vpop.xlane.xlu0 %255 }
 0x33a   :  { %v260_v40 = vsub.f32 %v247_v32, %v256_v39 }
 0x33c   :  { %v262_v41 = vmul.f32 1.442695, %v260_v40 }
 0x33d   :  { %v259_v42 = vpop.xlane.xlu0 %258 }
 0x33e   :  { %356 = vpow2.f32 %v262_v41  ;;  %v261_v43 = vsub.f32 %v250_v35, %v259_v42 }
 0x340   :  { %v264_v44 = vmul.f32 1.442695, %v261_v43 }
 0x342   :  { %358 = vpow2.f32 %v264_v44 }
 0x348   :  { %v357_v45 = vpop.eup %356 }
 0x349   :  { %v266_v46 = vsel %vm253_vm2, %v357_v45, 0.0 }
 0x34a   :  { %267 = vadd.xlane.f32.xlu1 %v266_v46 }
 0x34c   :  { %v359_v47 = vpop.eup %358 }
 0x34d   :  { %v269_v48 = vsel %vm253_vm2, %v359_v47, 0.0 }
 0x34e   :  { %270 = vadd.xlane.f32.xlu1 %v269_v48 }
 0x3d7   :  { %v268_v49 = vpop.xlane.xlu1 %267 }
 0x3d8   :  { %360 = vlog2.f32 %v268_v49 }
 0x3db   :  { %v271_v50 = vpop.xlane.xlu1 %270 }
 0x3dc   :  { %362 = vlog2.f32 %v271_v50 }
 0x3e2   :  { %v361_v51 = vpop.eup %360 }
 0x3e3   :  { %v273_v52 = vmul.f32 0.6931472, %v361_v51 }
 0x3e5   :  { %v276_v53 = vsub.f32 %v260_v40, %v273_v52 }
 0x3e6   :  { %v363_v54 = vpop.eup %362 }
 0x3e7   :  { %278 = vst.msk [vmem:[#allocation5] sm:$0xff] %vm253_vm2, %v276_v53  ;;  %v275_v55 = vmul.f32 0.6931472, %v363_v54 }
 0x3e9   :  { %v277_v56 = vsub.f32 %v261_v43, %v275_v55 }
 0x3eb   :  { %279 = vst.msk [vmem:[#allocation5 + $0x8] sm:$0xff] %vm253_vm2, %v277_v56 }
 0x3ec   :  { %397 = shalt.err (!%p394_p12)
}
 0x3ed   :  { %s398_s8 = scalar_lea.hbm %s527_s7, 256 }
 0x3ee   :  { %p399_p13 = scmp.ne.s32.totalorder %s527_s7, %s398_s8  ;;  %p402_p0 = scmp.lt.u32.totalorder %s398_s8, %s527_s7 }
 0x3f0   :  { %p404_p1 = pnand %p402_p0, %p399_p13 }
 0x3f2   :  { %407 = shalt.err (!%p404_p1)
}
 0x3f3   :  { %s418_s13 = smov 128   ;;  %s419_s14 = smov 8  }
 0x3f4   :  { %291 = dma.vmem_to_hbm [thread:$0]  %s286_s5, 256, %s527_s7, [#allocation4], %s418_s13, %s418_s13, %s419_s14  }
 0x3f5   :  { %410 = dma.done.wait [#allocation4], 256  }
 0x3f6   :  { %411 = vsyncadd [#allocation4], 4294967040 }
 0x3f7   :  { %295 = vsyncpa [#allocation3], 1 }
 0x3f8   :  { %296 = vsyncpa [#allocation4], 1 }

</bundles_post_ra>
